<compile_context>
chip_gen: v7x
topology: tpu7x:2x2x1
jax: 0.10.0
libtpu: 0.0.40
codegen_flags: <defaults>
</compile_context>

<pallas_src>
import functools

import jax
import jax.numpy as jnp
from jax.experimental import pallas as pl
from jax.experimental.pallas import tpu as pltpu


# ----------------------------- fused kernel ----------------------------------

def decoder_layer_kernel(x_ref, wqkv_ref, wo_ref, g1_ref, b1_ref,
                         w1_ref, bb1_ref, w2_ref, bb2_ref, g2_ref, b2_ref,
                         out_ref, *, n_head, d_head, eps):
    """One batch element per grid step: fused QKV -> per-head softmax attention
    -> o_net + residual + LN -> PositionwiseFF + LN (post-lnorm)."""
    H, Dh = n_head, d_head

    x = x_ref[0]                                   # (T, D) f32 residual path
    xb = x.astype(jnp.bfloat16)

    # --- fused q_net + kv_net projection: one wide MXU matmul (T, 3*H*Dh) ---
    # (the 1/sqrt(Dh) attention scale is pre-folded into the q columns)
    qkv = jnp.dot(xb, wqkv_ref[...], preferred_element_type=jnp.float32)
    qkv_b = qkv.astype(jnp.bfloat16)

    # --- scaled-dot-product attention, all heads inside this grid step ---
    head_outs = []
    for h in range(H):                             # static unroll over heads
        qh = qkv_b[:, (0 * H + h) * Dh:(0 * H + h + 1) * Dh]   # (T, Dh)
        kh = qkv_b[:, (1 * H + h) * Dh:(1 * H + h + 1) * Dh]
        vh = qkv_b[:, (2 * H + h) * Dh:(2 * H + h + 1) * Dh]
        # scores[i, j] = <q_i, k_j>  (contract over Dh, no transpose needed)
        s = jax.lax.dot_general(qh, kh, (((1,), (1,)), ((), ())),
                                preferred_element_type=jnp.float32)
        m = jnp.max(s, axis=-1, keepdims=True)
        e = jnp.exp(s - m)
        p = e * pl.reciprocal(jnp.sum(e, axis=-1, keepdims=True), approx=True)
        head_outs.append(jnp.dot(p.astype(jnp.bfloat16), vh,
                                 preferred_element_type=jnp.float32))
    attn_vec = jnp.concatenate(head_outs, axis=-1)              # (T, H*Dh) f32

    def ln(z, g, b):
        mu = jnp.mean(z, axis=-1, keepdims=True)
        var = jnp.mean((z - mu) ** 2, axis=-1, keepdims=True)
        return (z - mu) * jax.lax.rsqrt(var + eps) * g + b

    # --- o_net + residual + MultiHeadAttn layer_norm (post-lnorm) ---
    attn_out = jnp.dot(attn_vec.astype(jnp.bfloat16), wo_ref[...],
                       preferred_element_type=jnp.float32)
    xn = ln(x + attn_out, g1_ref[...], b1_ref[...])

    # --- PositionwiseFF CoreNet: Linear -> ReLU -> Linear (dropout = id) ---
    h1 = jnp.maximum(
        jnp.dot(xn.astype(jnp.bfloat16), w1_ref[...],
                preferred_element_type=jnp.float32) + bb1_ref[...], 0.0)
    ff = jnp.dot(h1.astype(jnp.bfloat16), w2_ref[...],
                 preferred_element_type=jnp.float32) + bb2_ref[...]

    out_ref[0] = ln(xn + ff, g2_ref[...], b2_ref[...])          # PFF layer_norm


# ----------------------------- wrapper ----------------------------------------

@functools.partial(jax.jit, static_argnames=("n_head", "d_head"))
def decoder_layer_forward(dec_inp, params, n_head, d_head):
    T, B, D = dec_inp.shape
    H, Dh = n_head, d_head
    d_inner = params['w1'].shape[1]
    scale = 1.0 / (Dh ** 0.5)

    # Time-major (T, B, D) -> batch-major (B, T, D): the only remaining layout
    # glue (fused into the surrounding jit); q/k/v/attn_vec never leave VMEM.
    x_btd = jnp.transpose(dec_inp, (1, 0, 2))

    # Fused QKV weight, column order [q | k | v] (matches q_net / kv_net chunk).
    # Fold the attention scale into the q columns while still in f32.
    wqkv = jnp.concatenate(
        [params['wq'] * scale, params['wk'], params['wv']],
        axis=1).astype(jnp.bfloat16)
    wo = params['wo'].astype(jnp.bfloat16)
    w1 = params['w1'].astype(jnp.bfloat16)
    w2 = params['w2'].astype(jnp.bfloat16)

    kern = functools.partial(decoder_layer_kernel, n_head=H, d_head=Dh,
                             eps=1e-5)

    def full(shape):                      # VMEM-resident operand (constant map)
        return pl.BlockSpec(shape, lambda b: (0,) * len(shape))

    flops = int(B * (2 * T * D * 3 * H * Dh        # qkv projection
                     + 4 * H * T * T * Dh          # scores + p @ v
                     + 2 * T * H * Dh * D          # o_net
                     + 4 * T * D * d_inner))       # FFN
    transcendentals = int(B * (H * T * T + 4 * T))
    bytes_accessed = int(2 * B * T * D * 4
                         + (D * 3 * H * Dh + H * Dh * D + 2 * D * d_inner) * 2
                         + (4 * D + d_inner) * 4)

    out_btd = pl.pallas_call(
        kern,
        grid=(B,),
        in_specs=[
            pl.BlockSpec((1, T, D), lambda b: (b, 0, 0)),       # activations
            full(wqkv.shape), full(wo.shape),
            full(params['g1'].shape), full(params['b1'].shape),
            full(w1.shape), full(params['bb1'].shape),
            full(w2.shape), full(params['bb2'].shape),
            full(params['g2'].shape), full(params['b2'].shape),
        ],
        out_specs=pl.BlockSpec((1, T, D), lambda b: (b, 0, 0)),
        out_shape=jax.ShapeDtypeStruct((B, T, D), jnp.float32),
        compiler_params=pltpu.CompilerParams(
            dimension_semantics=("parallel",),
            vmem_limit_bytes=32 * 1024 * 1024),
        cost_estimate=pl.CostEstimate(flops=flops,
                                      transcendentals=transcendentals,
                                      bytes_accessed=bytes_accessed),
    )(x_btd, wqkv, wo, params['g1'], params['b1'],
      w1, params['bb1'], w2, params['bb2'], params['g2'], params['b2'])

    return jnp.transpose(out_btd, (1, 0, 2))


# --------------------------- pure-JAX reference -------------------------------

def reference_forward(dec_inp, params, n_head, d_head):
    T, B, D = dec_inp.shape
    H, Dh = n_head, d_head
    hf = dec_inp.reshape(T * B, D)
    q = (hf @ params['wq']).reshape(T, B, H, Dh)
    k = (hf @ params['wk']).reshape(T, B, H, Dh)
    v = (hf @ params['wv']).reshape(T, B, H, Dh)
    s = jnp.einsum('ibnd,jbnd->ijbn', q, k) * (1.0 / Dh ** 0.5)
    p = jax.nn.softmax(s, axis=1)
    av = jnp.einsum('ijbn,jbnd->ibnd', p, v).reshape(T * B, H * Dh)

    def ln(z, g, b):
        mu = z.mean(-1, keepdims=True)
        var = ((z - mu) ** 2).mean(-1, keepdims=True)
        return (z - mu) / jnp.sqrt(var + 1e-5) * g + b

    x = hf + av @ params['wo']
    xn = ln(x, params['g1'], params['b1'])
    ff = jnp.maximum(xn @ params['w1'] + params['bb1'], 0.0) @ params['w2'] + params['bb2']
    out = ln(xn + ff, params['g2'], params['b2'])
    return out.reshape(T, B, D)


# ------------------------------- main -----------------------------------------

if __name__ == "__main__":
    # small shapes consistent with the module
    T, B = 8, 2            # seq_len, batch
    n_head, d_head = 2, 8
    d_model = 32
    d_inner = 64

    key = jax.random.PRNGKey(0)
    keys = jax.random.split(key, 10)

    def rnd(k, shape, s=0.05):
        return jax.random.normal(k, shape, dtype=jnp.float32) * s

    params = {
        # attention weights (stored as (in, out) so y = x @ W)
        'wq': rnd(keys[0], (d_model, n_head * d_head)),
        'wk': rnd(keys[1], (d_model, n_head * d_head)),
        'wv': rnd(keys[2], (d_model, n_head * d_head)),
        'wo': rnd(keys[3], (n_head * d_head, d_model)),
        # MultiHeadAttn layer_norm (default init: gamma=1, beta=0)
        'g1': jnp.ones((1, d_model), jnp.float32),
        'b1': jnp.zeros((1, d_model), jnp.float32),
        # PositionwiseFF CoreNet
        'w1': rnd(keys[4], (d_model, d_inner)),
        'bb1': rnd(keys[5], (1, d_inner)),
        'w2': rnd(keys[6], (d_inner, d_model)),
        'bb2': rnd(keys[7], (1, d_model)),
        # PositionwiseFF layer_norm
        'g2': jnp.ones((1, d_model), jnp.float32),
        'b2': jnp.zeros((1, d_model), jnp.float32),
    }

    dec_inp = jax.random.normal(keys[8], (T, B, d_model), dtype=jnp.float32)

    out = decoder_layer_forward(dec_inp, params, n_head, d_head)
    out = jax.block_until_ready(out)

    ref = reference_forward(dec_inp, params, n_head, d_head)
    assert out.shape == (T, B, d_model)
    # bf16 matmul operands + approx reciprocal -> loosened tolerance vs f32 ref
    assert jnp.allclose(out, ref, rtol=2e-2, atol=2e-2), (
        "mismatch vs reference, max abs diff %e" % float(jnp.max(jnp.abs(out - ref))))

    print("KERNEL_OK")
</pallas_src>

<mosaic_0001>
module attributes {stable_mosaic.version = 11 : i64} {
  func.func @decoder_layer_kernel(%arg0: i32, %arg1: memref<1x8x32xf32, #tpu.memory_space<vmem>>, %arg2: memref<32x48xbf16, #tpu.memory_space<vmem>>, %arg3: memref<16x32xbf16, #tpu.memory_space<vmem>>, %arg4: memref<1x32xf32, #tpu.memory_space<vmem>>, %arg5: memref<1x32xf32, #tpu.memory_space<vmem>>, %arg6: memref<32x64xbf16, #tpu.memory_space<vmem>>, %arg7: memref<1x64xf32, #tpu.memory_space<vmem>>, %arg8: memref<64x32xbf16, #tpu.memory_space<vmem>>, %arg9: memref<1x32xf32, #tpu.memory_space<vmem>>, %arg10: memref<1x32xf32, #tpu.memory_space<vmem>>, %arg11: memref<1x32xf32, #tpu.memory_space<vmem>>, %arg12: memref<1x8x32xf32, #tpu.memory_space<vmem>>) attributes {dimension_semantics = [#tpu.dimension_semantics<parallel>], iteration_bounds = array<i64: 2>, scalar_prefetch = 0 : i64, scratch_operands = 0 : i64, tpu.core_type = #tpu.core_type<tc>, window_params = [{transform_indices = @transform_0, window_bounds = array<i64: 1, 8, 32>}, {pipeline_mode = #tpu.pipeline_mode<synchronous>, transform_indices = @transform_1, window_bounds = array<i64: 32, 48>}, {pipeline_mode = #tpu.pipeline_mode<synchronous>, transform_indices = @transform_2, window_bounds = array<i64: 16, 32>}, {pipeline_mode = #tpu.pipeline_mode<synchronous>, transform_indices = @transform_3, window_bounds = array<i64: 1, 32>}, {pipeline_mode = #tpu.pipeline_mode<synchronous>, transform_indices = @transform_4, window_bounds = array<i64: 1, 32>}, {pipeline_mode = #tpu.pipeline_mode<synchronous>, transform_indices = @transform_5, window_bounds = array<i64: 32, 64>}, {pipeline_mode = #tpu.pipeline_mode<synchronous>, transform_indices = @transform_6, window_bounds = array<i64: 1, 64>}, {pipeline_mode = #tpu.pipeline_mode<synchronous>, transform_indices = @transform_7, window_bounds = array<i64: 64, 32>}, {pipeline_mode = #tpu.pipeline_mode<synchronous>, transform_indices = @transform_8, window_bounds = array<i64: 1, 32>}, {pipeline_mode = #tpu.pipeline_mode<synchronous>, transform_indices = @transform_9, window_bounds = array<i64: 1, 32>}, {pipeline_mode = #tpu.pipeline_mode<synchronous>, transform_indices = @transform_10, window_bounds = array<i64: 1, 32>}, {transform_indices = @transform_11, window_bounds = array<i64: 1, 8, 32>}]} {
    %c0 = arith.constant 0 : index
    %c0_0 = arith.constant 0 : index
    %c0_1 = arith.constant 0 : index
    %0 = vector.load %arg1[%c0, %c0_0, %c0_1] : memref<1x8x32xf32, #tpu.memory_space<vmem>>, vector<1x8x32xf32>
    %1 = vector.shape_cast %0 : vector<1x8x32xf32> to vector<8x32xf32>
    %2 = arith.truncf %1 : vector<8x32xf32> to vector<8x32xbf16>
    %c0_2 = arith.constant 0 : index
    %c0_3 = arith.constant 0 : index
    %3 = vector.load %arg2[%c0_2, %c0_3] : memref<32x48xbf16, #tpu.memory_space<vmem>>, vector<32x48xbf16>
    %cst = arith.constant dense<0.000000e+00> : vector<8x48xf32>
    %4 = tpu.matmul %2, %3, %cst {dimension_numbers = #tpu.dot_dimension_numbers<[1], [0], [0], [1], [0, 0, 1, 1], [], []>} : vector<8x32xbf16>, vector<32x48xbf16>, vector<8x48xf32> -> vector<8x48xf32>
    %5 = arith.truncf %4 : vector<8x48xf32> to vector<8x48xbf16>
    %6 = vector.extract_strided_slice %5 {offsets = [0, 0], sizes = [8, 8], strides = [1, 1]} : vector<8x48xbf16> to vector<8x8xbf16>
    %7 = vector.extract_strided_slice %5 {offsets = [0, 16], sizes = [8, 8], strides = [1, 1]} : vector<8x48xbf16> to vector<8x8xbf16>
    %8 = vector.extract_strided_slice %5 {offsets = [0, 32], sizes = [8, 8], strides = [1, 1]} : vector<8x48xbf16> to vector<8x8xbf16>
    %cst_4 = arith.constant dense<0.000000e+00> : vector<8x8xf32>
    %9 = tpu.matmul %6, %7, %cst_4 {dimension_numbers = #tpu.dot_dimension_numbers<[1], [1], [0], [0], [0, 0, 1, 0], [], []>} : vector<8x8xbf16>, vector<8x8xbf16>, vector<8x8xf32> -> vector<8x8xf32>
    %cst_5 = arith.constant dense<0xFF800000> : vector<8xf32>
    %10 = vector.multi_reduction <maximumf>, %9, %cst_5 [1] : vector<8x8xf32> to vector<8xf32>
    %11 = vector.shape_cast %10 : vector<8xf32> to vector<8x1xf32>
    %12 = vector.broadcast %11 : vector<8x1xf32> to vector<8x8xf32>
    %13 = arith.subf %9, %12 : vector<8x8xf32>
    %14 = math.exp %13 : vector<8x8xf32>
    %cst_6 = arith.constant dense<0.000000e+00> : vector<8xf32>
    %15 = vector.multi_reduction <add>, %14, %cst_6 [1] : vector<8x8xf32> to vector<8xf32>
    %16 = vector.shape_cast %15 : vector<8xf32> to vector<8x1xf32>
    %17 = tpu.reciprocal %16 {approx = true} : vector<8x1xf32> -> vector<8x1xf32>
    %18 = vector.broadcast %17 : vector<8x1xf32> to vector<8x8xf32>
    %19 = arith.mulf %14, %18 : vector<8x8xf32>
    %20 = arith.truncf %19 : vector<8x8xf32> to vector<8x8xbf16>
    %cst_7 = arith.constant dense<0.000000e+00> : vector<8x8xf32>
    %21 = tpu.matmul %20, %8, %cst_7 {dimension_numbers = #tpu.dot_dimension_numbers<[1], [0], [0], [1], [0, 0, 1, 1], [], []>} : vector<8x8xbf16>, vector<8x8xbf16>, vector<8x8xf32> -> vector<8x8xf32>
    %22 = vector.extract_strided_slice %5 {offsets = [0, 8], sizes = [8, 8], strides = [1, 1]} : vector<8x48xbf16> to vector<8x8xbf16>
    %23 = vector.extract_strided_slice %5 {offsets = [0, 24], sizes = [8, 8], strides = [1, 1]} : vector<8x48xbf16> to vector<8x8xbf16>
    %24 = vector.extract_strided_slice %5 {offsets = [0, 40], sizes = [8, 8], strides = [1, 1]} : vector<8x48xbf16> to vector<8x8xbf16>
    %cst_8 = arith.constant dense<0.000000e+00> : vector<8x8xf32>
    %25 = tpu.matmul %22, %23, %cst_8 {dimension_numbers = #tpu.dot_dimension_numbers<[1], [1], [0], [0], [0, 0, 1, 0], [], []>} : vector<8x8xbf16>, vector<8x8xbf16>, vector<8x8xf32> -> vector<8x8xf32>
    %cst_9 = arith.constant dense<0xFF800000> : vector<8xf32>
    %26 = vector.multi_reduction <maximumf>, %25, %cst_9 [1] : vector<8x8xf32> to vector<8xf32>
    %27 = vector.shape_cast %26 : vector<8xf32> to vector<8x1xf32>
    %28 = vector.broadcast %27 : vector<8x1xf32> to vector<8x8xf32>
    %29 = arith.subf %25, %28 : vector<8x8xf32>
    %30 = math.exp %29 : vector<8x8xf32>
    %cst_10 = arith.constant dense<0.000000e+00> : vector<8xf32>
    %31 = vector.multi_reduction <add>, %30, %cst_10 [1] : vector<8x8xf32> to vector<8xf32>
    %32 = vector.shape_cast %31 : vector<8xf32> to vector<8x1xf32>
    %33 = tpu.reciprocal %32 {approx = true} : vector<8x1xf32> -> vector<8x1xf32>
    %34 = vector.broadcast %33 : vector<8x1xf32> to vector<8x8xf32>
    %35 = arith.mulf %30, %34 : vector<8x8xf32>
    %36 = arith.truncf %35 : vector<8x8xf32> to vector<8x8xbf16>
    %cst_11 = arith.constant dense<0.000000e+00> : vector<8x8xf32>
    %37 = tpu.matmul %36, %24, %cst_11 {dimension_numbers = #tpu.dot_dimension_numbers<[1], [0], [0], [1], [0, 0, 1, 1], [], []>} : vector<8x8xbf16>, vector<8x8xbf16>, vector<8x8xf32> -> vector<8x8xf32>
    %38 = tpu.concatenate %21, %37 in 1 : vector<8x8xf32>, vector<8x8xf32> -> vector<8x16xf32>
    %39 = arith.truncf %38 : vector<8x16xf32> to vector<8x16xbf16>
    %c0_12 = arith.constant 0 : index
    %c0_13 = arith.constant 0 : index
    %40 = vector.load %arg3[%c0_12, %c0_13] : memref<16x32xbf16, #tpu.memory_space<vmem>>, vector<16x32xbf16>
    %cst_14 = arith.constant dense<0.000000e+00> : vector<8x32xf32>
    %41 = tpu.matmul %39, %40, %cst_14 {dimension_numbers = #tpu.dot_dimension_numbers<[1], [0], [0], [1], [0, 0, 1, 1], [], []>} : vector<8x16xbf16>, vector<16x32xbf16>, vector<8x32xf32> -> vector<8x32xf32>
    %42 = arith.addf %1, %41 : vector<8x32xf32>
    %c0_15 = arith.constant 0 : index
    %c0_16 = arith.constant 0 : index
    %43 = vector.load %arg4[%c0_15, %c0_16] : memref<1x32xf32, #tpu.memory_space<vmem>>, vector<1x32xf32>
    %c0_17 = arith.constant 0 : index
    %c0_18 = arith.constant 0 : index
    %44 = vector.load %arg5[%c0_17, %c0_18] : memref<1x32xf32, #tpu.memory_space<vmem>>, vector<1x32xf32>
    %cst_19 = arith.constant dense<0.000000e+00> : vector<8xf32>
    %45 = vector.multi_reduction <add>, %42, %cst_19 [1] : vector<8x32xf32> to vector<8xf32>
    %46 = vector.shape_cast %45 : vector<8xf32> to vector<8x1xf32>
    %cst_20 = arith.constant 3.200000e+01 : f32
    %47 = vector.broadcast %cst_20 : f32 to vector<8x1xf32>
    %48 = arith.divf %46, %47 : vector<8x1xf32>
    %49 = vector.broadcast %48 : vector<8x1xf32> to vector<8x32xf32>
    %50 = arith.subf %42, %49 : vector<8x32xf32>
    %51 = arith.mulf %50, %50 : vector<8x32xf32>
    %cst_21 = arith.constant dense<0.000000e+00> : vector<8xf32>
    %52 = vector.multi_reduction <add>, %51, %cst_21 [1] : vector<8x32xf32> to vector<8xf32>
    %53 = vector.shape_cast %52 : vector<8xf32> to vector<8x1xf32>
    %cst_22 = arith.constant 3.200000e+01 : f32
    %54 = vector.broadcast %cst_22 : f32 to vector<8x1xf32>
    %55 = arith.divf %53, %54 : vector<8x1xf32>
    %56 = vector.broadcast %48 : vector<8x1xf32> to vector<8x32xf32>
    %57 = arith.subf %42, %56 : vector<8x32xf32>
    %cst_23 = arith.constant 9.99999974E-6 : f32
    %58 = vector.broadcast %cst_23 : f32 to vector<8x1xf32>
    %59 = arith.addf %55, %58 : vector<8x1xf32>
    %60 = math.rsqrt %59 : vector<8x1xf32>
    %61 = vector.broadcast %60 : vector<8x1xf32> to vector<8x32xf32>
    %62 = arith.mulf %57, %61 : vector<8x32xf32>
    %63 = vector.broadcast %43 : vector<1x32xf32> to vector<8x32xf32>
    %64 = arith.mulf %62, %63 : vector<8x32xf32>
    %65 = vector.broadcast %44 : vector<1x32xf32> to vector<8x32xf32>
    %66 = arith.addf %64, %65 : vector<8x32xf32>
    %67 = arith.truncf %66 : vector<8x32xf32> to vector<8x32xbf16>
    %c0_24 = arith.constant 0 : index
    %c0_25 = arith.constant 0 : index
    %68 = vector.load %arg6[%c0_24, %c0_25] : memref<32x64xbf16, #tpu.memory_space<vmem>>, vector<32x64xbf16>
    %cst_26 = arith.constant dense<0.000000e+00> : vector<8x64xf32>
    %69 = tpu.matmul %67, %68, %cst_26 {dimension_numbers = #tpu.dot_dimension_numbers<[1], [0], [0], [1], [0, 0, 1, 1], [], []>} : vector<8x32xbf16>, vector<32x64xbf16>, vector<8x64xf32> -> vector<8x64xf32>
    %c0_27 = arith.constant 0 : index
    %c0_28 = arith.constant 0 : index
    %70 = vector.load %arg7[%c0_27, %c0_28] : memref<1x64xf32, #tpu.memory_space<vmem>>, vector<1x64xf32>
    %71 = vector.broadcast %70 : vector<1x64xf32> to vector<8x64xf32>
    %72 = arith.addf %69, %71 : vector<8x64xf32>
    %cst_29 = arith.constant 0.000000e+00 : f32
    %73 = vector.broadcast %cst_29 : f32 to vector<8x64xf32>
    %74 = arith.maximumf %72, %73 : vector<8x64xf32>
    %75 = arith.truncf %74 : vector<8x64xf32> to vector<8x64xbf16>
    %c0_30 = arith.constant 0 : index
    %c0_31 = arith.constant 0 : index
    %76 = vector.load %arg8[%c0_30, %c0_31] : memref<64x32xbf16, #tpu.memory_space<vmem>>, vector<64x32xbf16>
    %cst_32 = arith.constant dense<0.000000e+00> : vector<8x32xf32>
    %77 = tpu.matmul %75, %76, %cst_32 {dimension_numbers = #tpu.dot_dimension_numbers<[1], [0], [0], [1], [0, 0, 1, 1], [], []>} : vector<8x64xbf16>, vector<64x32xbf16>, vector<8x32xf32> -> vector<8x32xf32>
    %c0_33 = arith.constant 0 : index
    %c0_34 = arith.constant 0 : index
    %78 = vector.load %arg9[%c0_33, %c0_34] : memref<1x32xf32, #tpu.memory_space<vmem>>, vector<1x32xf32>
    %79 = vector.broadcast %78 : vector<1x32xf32> to vector<8x32xf32>
    %80 = arith.addf %77, %79 : vector<8x32xf32>
    %81 = arith.addf %66, %80 : vector<8x32xf32>
    %c0_35 = arith.constant 0 : index
    %c0_36 = arith.constant 0 : index
    %82 = vector.load %arg10[%c0_35, %c0_36] : memref<1x32xf32, #tpu.memory_space<vmem>>, vector<1x32xf32>
    %c0_37 = arith.constant 0 : index
    %c0_38 = arith.constant 0 : index
    %83 = vector.load %arg11[%c0_37, %c0_38] : memref<1x32xf32, #tpu.memory_space<vmem>>, vector<1x32xf32>
    %cst_39 = arith.constant dense<0.000000e+00> : vector<8xf32>
    %84 = vector.multi_reduction <add>, %81, %cst_39 [1] : vector<8x32xf32> to vector<8xf32>
    %85 = vector.shape_cast %84 : vector<8xf32> to vector<8x1xf32>
    %cst_40 = arith.constant 3.200000e+01 : f32
    %86 = vector.broadcast %cst_40 : f32 to vector<8x1xf32>
    %87 = arith.divf %85, %86 : vector<8x1xf32>
    %88 = vector.broadcast %87 : vector<8x1xf32> to vector<8x32xf32>
    %89 = arith.subf %81, %88 : vector<8x32xf32>
    %90 = arith.mulf %89, %89 : vector<8x32xf32>
    %cst_41 = arith.constant dense<0.000000e+00> : vector<8xf32>
    %91 = vector.multi_reduction <add>, %90, %cst_41 [1] : vector<8x32xf32> to vector<8xf32>
    %92 = vector.shape_cast %91 : vector<8xf32> to vector<8x1xf32>
    %cst_42 = arith.constant 3.200000e+01 : f32
    %93 = vector.broadcast %cst_42 : f32 to vector<8x1xf32>
    %94 = arith.divf %92, %93 : vector<8x1xf32>
    %95 = vector.broadcast %87 : vector<8x1xf32> to vector<8x32xf32>
    %96 = arith.subf %81, %95 : vector<8x32xf32>
    %cst_43 = arith.constant 9.99999974E-6 : f32
    %97 = vector.broadcast %cst_43 : f32 to vector<8x1xf32>
    %98 = arith.addf %94, %97 : vector<8x1xf32>
    %99 = math.rsqrt %98 : vector<8x1xf32>
    %100 = vector.broadcast %99 : vector<8x1xf32> to vector<8x32xf32>
    %101 = arith.mulf %96, %100 : vector<8x32xf32>
    %102 = vector.broadcast %82 : vector<1x32xf32> to vector<8x32xf32>
    %103 = arith.mulf %101, %102 : vector<8x32xf32>
    %104 = vector.broadcast %83 : vector<1x32xf32> to vector<8x32xf32>
    %105 = arith.addf %103, %104 : vector<8x32xf32>
    %c0_44 = arith.constant 0 : index
    %c0_45 = arith.constant 0 : index
    %c0_46 = arith.constant 0 : index
    %106 = vector.load %arg12[%c0_44, %c0_45, %c0_46] : memref<1x8x32xf32, #tpu.memory_space<vmem>>, vector<1x8x32xf32>
    %107 = vector.shape_cast %106 : vector<1x8x32xf32> to vector<8x32xf32>
    %108 = vector.shape_cast %105 : vector<8x32xf32> to vector<1x8x32xf32>
    tpu.vector_store %arg12[%c0_44, %c0_45, %c0_46], %108 {strides = array<i32>} : memref<1x8x32xf32, #tpu.memory_space<vmem>>, vector<1x8x32xf32>,
    return
  }
  func.func @transform_0(%arg0: i32) -> (i32, i32, i32) {
    %c0_i32 = arith.constant 0 : i32
    %c0_i32_0 = arith.constant 0 : i32
    %c0_i32_1 = arith.constant 0 : i32
    return %arg0, %c0_i32, %c0_i32_0 : i32, i32, i32
  }
  func.func @transform_1(%arg0: i32) -> (i32, i32) {
    %c0_i32 = arith.constant 0 : i32
    %c0_i32_0 = arith.constant 0 : i32
    %c0_i32_1 = arith.constant 0 : i32
    return %c0_i32, %c0_i32_0 : i32, i32
  }
  func.func @transform_2(%arg0: i32) -> (i32, i32) {
    %c0_i32 = arith.constant 0 : i32
    %c0_i32_0 = arith.constant 0 : i32
    %c0_i32_1 = arith.constant 0 : i32
    return %c0_i32, %c0_i32_0 : i32, i32
  }
  func.func @transform_3(%arg0: i32) -> (i32, i32) {
    %c0_i32 = arith.constant 0 : i32
    %c0_i32_0 = arith.constant 0 : i32
    %c0_i32_1 = arith.constant 0 : i32
    return %c0_i32, %c0_i32_0 : i32, i32
  }
  func.func @transform_4(%arg0: i32) -> (i32, i32) {
    %c0_i32 = arith.constant 0 : i32
    %c0_i32_0 = arith.constant 0 : i32
    %c0_i32_1 = arith.constant 0 : i32
    return %c0_i32, %c0_i32_0 : i32, i32
  }
  func.func @transform_5(%arg0: i32) -> (i32, i32) {
    %c0_i32 = arith.constant 0 : i32
    %c0_i32_0 = arith.constant 0 : i32
    %c0_i32_1 = arith.constant 0 : i32
    return %c0_i32, %c0_i32_0 : i32, i32
  }
  func.func @transform_6(%arg0: i32) -> (i32, i32) {
    %c0_i32 = arith.constant 0 : i32
    %c0_i32_0 = arith.constant 0 : i32
    %c0_i32_1 = arith.constant 0 : i32
    return %c0_i32, %c0_i32_0 : i32, i32
  }
  func.func @transform_7(%arg0: i32) -> (i32, i32) {
    %c0_i32 = arith.constant 0 : i32
    %c0_i32_0 = arith.constant 0 : i32
    %c0_i32_1 = arith.constant 0 : i32
    return %c0_i32, %c0_i32_0 : i32, i32
  }
  func.func @transform_8(%arg0: i32) -> (i32, i32) {
    %c0_i32 = arith.constant 0 : i32
    %c0_i32_0 = arith.constant 0 : i32
    %c0_i32_1 = arith.constant 0 : i32
    return %c0_i32, %c0_i32_0 : i32, i32
  }
  func.func @transform_9(%arg0: i32) -> (i32, i32) {
    %c0_i32 = arith.constant 0 : i32
    %c0_i32_0 = arith.constant 0 : i32
    %c0_i32_1 = arith.constant 0 : i32
    return %c0_i32, %c0_i32_0 : i32, i32
  }
  func.func @transform_10(%arg0: i32) -> (i32, i32) {
    %c0_i32 = arith.constant 0 : i32
    %c0_i32_0 = arith.constant 0 : i32
    %c0_i32_1 = arith.constant 0 : i32
    return %c0_i32, %c0_i32_0 : i32, i32
  }
  func.func @transform_11(%arg0: i32) -> (i32, i32, i32) {
    %c0_i32 = arith.constant 0 : i32
    %c0_i32_0 = arith.constant 0 : i32
    %c0_i32_1 = arith.constant 0 : i32
    return %arg0, %c0_i32, %c0_i32_0 : i32, i32, i32
  }
}

</mosaic_0001>

<bundles_post_ra>
// kernel: decoder_layer_forward.1
= control target key start
LH: loop header
LB: loop body
LE: loop exit
PB: predicated region body
PF: predicated region fallthrough
CT: control target
= control target key end

     0   :  { %s1216_s17 = smov 0   ;;  %s1337_s0 = inlined_call_operand.vmem [shape: f32[2,8,32], index: 0, kind: input, shape index: {}]   ;;  %s1338_s1 = inlined_call_operand.vmem [shape: bf16[32,48], index: 1, kind: input, shape index: {}]   ;;  %s1339_s2 = inlined_call_operand.vmem [shape: bf16[16,32], index: 2, kind: input, shape index: {}]   ;;  %s1340_s3 = inlined_call_operand.vmem [shape: f32[1,32], index: 3, kind: input, shape index: {}]   ;;  %s1341_s4 = inlined_call_operand.vmem [shape: f32[1,32], index: 4, kind: input, shape index: {}]   ;;  %s1342_s5 = inlined_call_operand.vmem [shape: bf16[32,64], index: 5, kind: input, shape index: {}]   ;;  %s1343_s6 = inlined_call_operand.vmem [shape: f32[1,64], index: 6, kind: input, shape index: {}]   ;;  %s1344_s7 = inlined_call_operand.vmem [shape: bf16[64,32], index: 7, kind: input, shape index: {}]   ;;  %s1345_s8 = inlined_call_operand.vmem [shape: f32[1,32], index: 8, kind: input, shape index: {}]   ;;  %s1346_s9 = inlined_call_operand.vmem [shape: f32[1,32], index: 9, kind: input, shape index: {}]   ;;  %s1347_s10 = inlined_call_operand.vmem [shape: f32[1,32], index: 10, kind: input, shape index: {}]   ;;  %s1348_s11 = inlined_call_operand.vmem [shape: f32[2,8,32], index: 11, kind: output, shape index: {}]  }
   0x1 LB: > { %s992_s18 = sadd.s32 4294967295, %s1146_s17   ;;  %p996_p0 = scmp.ge.s32.totalorder %s1146_s17, 1  ;;  %s1146_s17 = sphi %s1216_s17, %s21_s17  }
   0x2   : > { %p336_p1 = scmp.lt.s32.totalorder %s1146_s17, 3 }
   0x4   : > { %p337_p2 = pnand %p996_p0, %p336_p1 }
   0x5   : > { %v1119_v0 = vld [vmem:[%s1338_s1] sm:$0xff] (!%p337_p2)   ;;  %v1148_v1 = vmov (!%p337_p2), 0.0   ;;  %v1120_v2 = vld [vmem:[%s1338_s1 + $0x8] sm:$0xff] (!%p337_p2)   ;;  %vm1149_vm0 = vmmov (!%p337_p2), 0   ;;  %p374_p3 = scmp.lt.s32.totalorder (!%p337_p2), %s992_s18, 1  ;;  %vm401_vm1 = vcmask (!%p337_p2), 261120  }
   0x6   : > { %340 = sbr.rel (%p337_p2) target bundleno = 2499 (0x9c3), region = 64  ;;  %1045 = vmatprep.subr.bf16.mxu0 (!%p337_p2), %v1148_v1  ;;  %1053 = vmatprep.subr.bf16.mxu1 (!%p337_p2), %v1148_v1  ;;  %s1150_s27 = smov (!%p337_p2), 120   ;;  %vm449_vm2 = vcmask (!%p337_p2), 64512   ;;  %vm513_vm3 = vcmask (!%p337_p2), 1043456   ;;  %v1121_v47 = vld [vmem:[%s1339_s2] sm:$0xff] (!%p337_p2)   ;;  %vm681_vm4 = vcmask (!%p337_p2), 130048  }
   0x7   : > { %1046 = vmatpush3.bf16.msra.mxu0 (!%p337_p2), %v1119_v0  ;;  %1049 = vmatprep.mubr.msk.bf16.mxu0 (!%p337_p2), %vm1149_vm0, %v1148_v1  ;;  %s1151_s28 = smov (!%p337_p2), 112   ;;  %s1152_s29 = smov (!%p337_p2), 104   ;;  %vm864_vm5 = vcmask (!%p337_p2), 523264  }
   0x8   : > { %1047 = vmatprep.subr.bf16.mxu0 (!%p337_p2), %v1148_v1  ;;  %1055 = vmatprep.mubr.msk.bf16.mxu1 (!%p337_p2), %vm1149_vm0, %v1148_v1  ;;  %s1153_s30 = smov (!%p337_p2), 96   ;;  %s1154_s12 = smov (!%p337_p2), 88  }
   0x9   : > { %s1155_s15 = smov (!%p337_p2), 8  }
   0xb   : > { %1048 = vmatpush3.bf16.msra.mxu0 (!%p337_p2), %v1120_v2 }
   0xc   : > { %1059 = vmatprep.subr.bf16.mxu0 (!%p337_p2), %v1148_v1 }
   0xd   : > { %s1350_s18 = smov (!%p374_p3, %s992_s18), 1 }
   0xe   : > { %s997_s23 = sshll.u32 %s1350_s18, 3 }
   0xf   : > { %s377_s26 = scalar_lea.vmem %s1337_s0, %s997_s23 }
  0x10   : > { %v1246_v3 = vld [vmem:[%s377_s26] sm:$0xff] }
  0x11   : > { %v384_v4 = vpack.c.bf16 %v1246_v3, %v1246_v3 }
  0x13   : > { %1050 = vmatmul.mubr.msk.bf16.vlgmr.msra.gmra.mrb[0].mxu0 %vm401_vm1, %v384_v4 }
  0x14   : > { %1061 = vmatprep.mubr.msk.bf16.mxu0 %vm1149_vm0, %v1148_v1 }
  0xe6   : > { %v439_v5 = vpop.f32.mrb[0].mxu0 }
  0xe7   : > { %v445_v6 = vpack.c.bf16 %v439_v5, %v439_v5  ;;  %v1051_v7 = vpop.f32.mrb[1].mxu0 }
  0xe8   : > { %v442_v8 = vpop.f32.mrb[2].mxu0 }
  0xe9   : > { %557 = vrot.lane.b32.xlu1 %v445_v6, %s1150_s27  ;;  %447 = vrot.lane.b32.xlu0 %v445_v6, %s1151_s28  ;;  %v1052_v9 = vpop.f32.mrb[3].mxu0  ;;  %v1122_v8 = vld [vmem:[%s1342_s5] sm:$0xff]  }
  0xea   : > { %v1124_v9 = vld [vmem:[%s1344_s7] sm:$0xff]  }
  0xed   : > { %559 = vrot.lane.b32.xlu0 %v445_v6, %s1152_s29  ;;  %s381_s29 = scalar_lea.vmem %s1348_s11, %s997_s23 }
 0x15b   : > { %v448_v10 = vpop.permute.xlu0 %447  ;;  %v558_v14 = vpop.permute.xlu1 %557 }
 0x15c   : > { %v454_v11 = vsel %vm449_vm2, %v448_v10, 0  ;;  %v1125_v10 = vld [vmem:[%s1344_s7 + $0x8] sm:$0xff]  }
 0x15d   : > { %1054 = vmatpush3.bf16.xpose.msra.mxu1 %v454_v11 }
 0x15e   : > { %1065 = vmatprep.subr.bf16.mxu1 %v1148_v1 }
 0x15f   : > { %v560_v12 = vpop.permute.xlu0 %559 }
 0x160   : > { %v565_v13 = vsel %vm449_vm2, %v560_v12, 0 }
 0x164   : > { %1056 = vmatmul.mubr.msk.bf16.vlgmr.msra.gmra.mrb[0].mxu1 %vm449_vm2, %v445_v6 }
 0x165   : > { %1066 = vmatpush3.bf16.xpose.msra.mxu1 %v565_v13  ;;  %1067 = vmatprep.mubr.msk.bf16.mxu1 %vm1149_vm0, %v1148_v1 }
 0x166   : > { %1077 = vmatprep.subr.bf16.mxu1 %v1148_v1 }
 0x16c   : > { %1068 = vmatmul.mubr.msk.bf16.vlgmr.msra.gmra.mrb[4].mxu1 %vm449_vm2, %v558_v14 }
 0x16d   : > { %1079 = vmatprep.mubr.msk.bf16.mxu1 %vm1149_vm0, %v1148_v1  ;;  %1078 = vmatpush3.bf16.msra.mxu1 %v1121_v47  ;;  %v1020_v47 = vld [vmem:[%s1346_s9] ss:$0 sm:$0xff] }
 0x16e   : > { %1091 = vmatprep.subr.bf16.mxu1 %v1148_v1 }
 0x237   : > { %v490_v15 = vpop.f32.mrb[0].mxu1 }
 0x238   : > { %v1057_v16 = vpop.f32.mrb[1].mxu1  ;;  %v496_v17 = vsel %vm449_vm2, %v490_v15, -inf }
 0x239   : > { %497 = vmax.xlane.f32.xlu1 %v496_v17  ;;  %v493_v18 = vpop.f32.mrb[2].mxu1  ;;  %v1009_v17 = vld [vmem:[%s1341_s4] ss:$0 sm:$0xff] }
 0x23a   : > { %v1058_v19 = vpop.f32.mrb[3].mxu1 }
 0x23f   : > { %v601_v20 = vpop.f32.mrb[4].mxu1 }
 0x240   : > { %v1069_v21 = vpop.f32.mrb[5].mxu1  ;;  %v607_v22 = vsel %vm449_vm2, %v601_v20, -inf }
 0x241   : > { %608 = vmax.xlane.f32.xlu0 %v607_v22  ;;  %v604_v23 = vpop.f32.mrb[6].mxu1  ;;  %v1126_v21 = vld [vmem:[%s1344_s7 + $0x10] sm:$0xff]   ;;  %v1127_v22 = vld [vmem:[%s1344_s7 + $0x18] sm:$0xff]  }
 0x242   : > { %v1070_v24 = vpop.f32.mrb[7].mxu1  ;;  %v1010_v23 = vld [vmem:[%s1343_s6] ss:$0 sm:$0xff] }
 0x2c6   : > { %v498_v25 = vpop.xlane.xlu1 %497 }
 0x2c7   : > { %v499_v26 = vsub.f32 %v490_v15, %v498_v25  ;;  %v1008_v15 = vld [vmem:[%s1340_s3] ss:$0 sm:$0xff] }
 0x2c9   : > { %v500_v27 = vmul.f32 1.442695, %v499_v26 }
 0x2cb   : > { %1128 = vpow2.f32 %v500_v27 }
 0x2ce   : > { %v609_v28 = vpop.xlane.xlu0 %608 }
 0x2cf   : > { %v610_v29 = vsub.f32 %v601_v20, %v609_v28 }
 0x2d1   : > { %v611_v30 = vmul.f32 1.442695, %v610_v29 }
 0x2d3   : > { %1130 = vpow2.f32 %v611_v30 }
 0x2d5   : > { %v1129_v31 = vpop.eup %1128 }
 0x2d6   : > { %v502_v32 = vsel %vm449_vm2, %v1129_v31, 0.0 }
 0x2d7   : > { %503 = vadd.xlane.f32.xlu0 %v502_v32 }
 0x2dd   : > { %v1131_v33 = vpop.eup %1130 }
 0x2de   : > { %v613_v34 = vsel %vm449_vm2, %v1131_v33, 0.0 }
 0x2df   : > { %614 = vadd.xlane.f32.xlu1 %v613_v34 }
 0x2ed   : > { %508 = vrot.lane.b32.xlu0 %v445_v6, %s1153_s30 }
 0x2f0   : > { %619 = vrot.lane.b32.xlu1 %v445_v6, %s1154_s12 }
 0x364   : > { %v504_v35 = vpop.xlane.xlu0 %503 }
 0x365   : > { %1132 = vrcp.f32 %v504_v35 }
 0x368   : > { %v509_v36 = vpop.permute.xlu0 %508 }
 0x369   : > { %v515_v37 = vsel %vm513_vm3, %v509_v36, 0 }
 0x36a   : > { %1060 = vmatpush3.bf16.msra.mxu0 %v515_v37 }
 0x36b   : > { %1071 = vmatprep.subr.bf16.mxu0 %v1148_v1 }
 0x36c   : > { %v615_v38 = vpop.xlane.xlu1 %614 }
 0x36d   : > { %1134 = vrcp.f32 %v615_v38 }
 0x36f   : > { %v1133_v39 = vpop.eup %1132 }
 0x370   : > { %v506_v40 = vmul.f32 %v1133_v39, %v1129_v31  ;;  %v620_v41 = vpop.permute.xlu1 %619 }
 0x371   : > { %v625_v43 = vsel %vm513_vm3, %v620_v41, 0 }
 0x372   : > { %v507_v42 = vpack.c.bf16 %v506_v40, %v506_v40 }
 0x374   : > { %1062 = vmatmul.mubr.msk.bf16.vlgmr.msra.gmra.mrb[4].mxu0 %vm449_vm2, %v507_v42 }
 0x375   : > { %1072 = vmatpush3.bf16.msra.mxu0 %v625_v43  ;;  %1073 = vmatprep.mubr.msk.bf16.mxu0 %vm1149_vm0, %v1148_v1 }
 0x376   : > { %1083 = vmatprep.subr.bf16.mxu0 %v1148_v1 }
 0x377   : > { %v1135_v44 = vpop.eup %1134 }
 0x378   : > { %v617_v45 = vmul.f32 %v1135_v44, %v1131_v33 }
 0x37a   : > { %v618_v46 = vpack.c.bf16 %v617_v45, %v617_v45 }
 0x37c   : > { %1074 = vmatmul.mubr.msk.bf16.vlgmr.msra.gmra.mrb[8].mxu0 %vm449_vm2, %v618_v46 }
 0x37d   : > { %1087 = vmatprep.mubr.msk.bf16.mxu0 %vm1149_vm0, %v1148_v1  ;;  %1084 = vmatpush3.bf16.msra.mxu0 %v1122_v8 }
 0x37e   : > { %1085 = vmatprep.subr.bf16.mxu0 %v1148_v1 }
 0x447   : > { %v551_v48 = vpop.f32.mrb[4].mxu0 }
 0x448   : > { %v1063_v49 = vpop.f32.mrb[5].mxu0 }
 0x449   : > { %v554_v50 = vpop.f32.mrb[6].mxu0  ;;  %v1021_v49 = vld [vmem:[%s1347_s10] ss:$0 sm:$0xff] }
 0x44a   : > { %v1064_v51 = vpop.f32.mrb[7].mxu0 }
 0x44f   : > { %v661_v52 = vpop.f32.mrb[8].mxu0 }
 0x450   : > { %668 = vrot.lane.b32.xlu1 %v661_v52, %s1155_s15  ;;  %v1075_v53 = vpop.f32.mrb[9].mxu0 }
 0x451   : > { %v664_v54 = vpop.f32.mrb[10].mxu0 }
 0x452   : > { %v1076_v55 = vpop.f32.mrb[11].mxu0 }
 0x4c2   : > { %v669_v56 = vpop.permute.xlu1 %668 }
 0x4c3   : > { %v671_v57 = vsel %vm449_vm2, %v551_v48, %v669_v56 }
 0x4c4   : > { %v672_v58 = vpack.c.bf16 %v671_v57, %v671_v57 }
 0x4c6   : > { %1080 = vmatmul.mubr.msk.bf16.vlgmr.msra.gmra.mrb[8].mxu1 %vm681_vm4, %v672_v58 }
 0x4c7   : > { %1099 = vmatprep.mubr.msk.bf16.mxu1 %vm1149_vm0, %v1148_v1  ;;  %1092 = vmatpush3.bf16.msra.mxu1 %v1124_v9 }
 0x4c8   : > { %1093 = vmatprep.subr.bf16.mxu1 %v1148_v1 }
 0x4cb   : > { %1094 = vmatpush3.bf16.msra.mxu1 %v1125_v10 }
 0x4cc   : > { %1095 = vmatprep.subr.bf16.mxu1 %v1148_v1 }
 0x4cf   : > { %1096 = vmatpush3.bf16.msra.mxu1 %v1126_v21 }
 0x4d0   : > { %1097 = vmatprep.subr.bf16.mxu1 %v1148_v1  ;;  %v1014_v1 = vld [vmem:[%s1345_s8] ss:$0 sm:$0xff] }
 0x4d3   : > { %1098 = vmatpush3.bf16.msra.mxu1 %v1127_v22 }
 0x599   : > { %v719_v59 = vpop.f32.mrb[8].mxu1 }
 0x59a   : > { %v725_v60 = vadd.f32 %v719_v59, %v1246_v3  ;;  %v1081_v61 = vpop.f32.mrb[9].mxu1  ;;  %v1123_v3 = vld [vmem:[%s1342_s5 + $0x8] sm:$0xff]  }
 0x59b   : > { %v722_v62 = vpop.f32.mrb[10].mxu1  ;;  %1086 = vmatpush3.bf16.msra.mxu0 %v1123_v3 }
 0x59c   : > { %v1082_v63 = vpop.f32.mrb[11].mxu1  ;;  %v728_v0 = vsel %vm401_vm1, %v725_v60, 0.0 }
 0x59d   : > { %729 = vadd.xlane.f32.xlu0 %v728_v0 }
 0x62a   : > { %v730_v2 = vpop.xlane.xlu0 %729 }
 0x62b   : > { %v732_v4 = vmul.f32 0.03125, %v730_v2 }
 0x62d   : > { %v733_v5 = vsub.f32 %v725_v60, %v732_v4 }
 0x62f   : > { %v734_v6 = vmul.f32 %v733_v5, %v733_v5 }
 0x631   : > { %v735_v7 = vsel %vm401_vm1, %v734_v6, 0.0 }
 0x632   : > { %736 = vadd.xlane.f32.xlu1 %v735_v7 }
 0x6bf   : > { %v737_v11 = vpop.xlane.xlu1 %736 }
 0x6c0   : > { %v738_v12 = vmul.f32 0.03125, %v737_v11 }
 0x6c2   : > { %v739_v13 = vadd.f32 1e-05, %v738_v12 }
 0x6c4   : > { %1136 = vrsqrt.f32 %v739_v13 }
 0x6ce   : > { %v1137_v14 = vpop.eup %1136 }
 0x6cf   : > { %v741_v16 = vmul.f32 %v1137_v14, %v733_v5 }
 0x6d1   : > { %v748_v18 = vmul.f32 %v1008_v15, %v741_v16 }
 0x6d3   : > { %v755_v19 = vadd.f32 %v1009_v17, %v748_v18 }
 0x6d5   : > { %v756_v20 = vpack.c.bf16 %v755_v19, %v755_v19 }
 0x6d7   : > { %1088 = vmatmul.mubr.msk.bf16.vlgmr.msra.gmra.mrb[12].mxu0 %vm401_vm1, %v756_v20 }
 0x7aa   : > { %v817_v24 = vpop.f32.mrb[12].mxu0 }
 0x7ab   : > { %v818_v25 = vadd.f32 %v1010_v23, %v817_v24  ;;  %v1089_v26 = vpop.f32.mrb[13].mxu0 }
 0x7ac   : > { %v820_v27 = vpop.f32.mrb[14].mxu0 }
 0x7ad   : > { %v823_v28 = vmax.f32 %v818_v25, 0.0  ;;  %v1090_v29 = vpop.f32.mrb[15].mxu0 }
 0x7af   : > { %v824_v30 = vpack.c.bf16 %v823_v28, %v823_v28 }
 0x7b1   : > { %1100 = vmatmul.mubr.msk.bf16.vlgmr.msra.gmra.mrb[12].mxu1 %vm864_vm5, %v824_v30 }
 0x884   : > { %v902_v31 = vpop.f32.mrb[12].mxu1 }
 0x885   : > { %v903_v32 = vadd.f32 %v1014_v1, %v902_v31  ;;  %v1101_v33 = vpop.f32.mrb[13].mxu1 }
 0x886   : > { %v905_v34 = vpop.f32.mrb[14].mxu1 }
 0x887   : > { %v1102_v35 = vpop.f32.mrb[15].mxu1  ;;  %v908_v36 = vadd.f32 %v903_v32, %v755_v19 }
 0x889   : > { %v911_v37 = vsel %vm401_vm1, %v908_v36, 0.0 }
 0x88a   : > { %912 = vadd.xlane.f32.xlu0 %v911_v37 }
 0x917   : > { %v913_v38 = vpop.xlane.xlu0 %912 }
 0x918   : > { %v914_v39 = vmul.f32 0.03125, %v913_v38 }
 0x91a   : > { %v915_v40 = vsub.f32 %v908_v36, %v914_v39 }
 0x91c   : > { %v916_v41 = vmul.f32 %v915_v40, %v915_v40 }
 0x91e   : > { %v917_v42 = vsel %vm401_vm1, %v916_v41, 0.0 }
 0x91f   : > { %918 = vadd.xlane.f32.xlu0 %v917_v42 }
 0x9ac   : > { %v919_v43 = vpop.xlane.xlu0 %918 }
 0x9ad   : > { %v920_v44 = vmul.f32 0.03125, %v919_v43 }
 0x9af   : > { %v921_v45 = vadd.f32 1e-05, %v920_v44 }
 0x9b1   : > { %1138 = vrsqrt.f32 %v921_v45 }
 0x9bb   : > { %v1139_v46 = vpop.eup %1138 }
 0x9bc   : > { %v923_v48 = vmul.f32 %v1139_v46, %v915_v40 }
 0x9be   : > { %v930_v50 = vmul.f32 %v1020_v47, %v923_v48 }
 0x9c0   : > { %v937_v51 = vadd.f32 %v1021_v49, %v930_v50 }
 0x9c2   : > { %938 = vst.msk [vmem:[%s381_s29] sm:$0xff] %vm401_vm1, %v937_v51 }
 0x9c3 PF: > { %s21_s17 = sadd.s32 1, %s1146_s17  }
 0x9c4   : > { %p18_p4 = scmp.ge.s32.totalorder %s21_s17, 4  }
 0x9c6   :  { %20 = sbr.rel (!%p18_p4) target bundleno = 1 (0x1), region = 94 }

</bundles_post_ra>
